<compile_context>
chip_gen: v7x
topology: tpu7x:2x2x1
jax: 0.10.0
libtpu: 0.0.40
codegen_flags: <defaults>
</compile_context>

<pallas_src>
import functools

import jax
import jax.numpy as jnp
from jax import lax
from jax.experimental import pallas as pl
from jax.experimental.pallas import tpu as pltpu


def _round_up(x, m):
    return (x + m - 1) // m * m


# ----------------------------- Pallas kernel ------------------------------- #
def _gwr_kernel(x_ref, adjt_ref, w_in_ref, b_in_ref, w_h_ref, b_h_ref,
                w_out_ref, b_out_ref, out_ref,
                *, n_hidden, bb, n, matmul_dtype):
    """One grid step == bb graphs packed block-diagonally.

    x_ref    : (bb*n, gi)   node features, bb graphs stacked row-wise
    adjt_ref : (bb, n, n)   adjt[b, i, j] != 0  <=>  edge j -> i in graph b
    out_ref  : (bb*n, ghp)  averaged layer outputs (feature dim padded to 128k)
    """
    m = bb * n

    # ---- block-diagonal adjacency A (+ self loops), built once per step ----
    eye_n = (lax.broadcasted_iota(jnp.int32, (n, n), 0) ==
             lax.broadcasted_iota(jnp.int32, (n, n), 1))
    if bb == 1:
        a = jnp.where(eye_n | (adjt_ref[0] != 0.0), 1.0, 0.0).astype(jnp.float32)
    else:
        lane_ids = lax.broadcasted_iota(jnp.int32, (n, m), 1)
        local_ids = lax.broadcasted_iota(jnp.int32, (n, m), 0)
        strips = []
        for b in range(bb):
            a_b = jnp.where(eye_n | (adjt_ref[b] != 0.0),
                            1.0, 0.0).astype(jnp.float32)       # (n, n)
            # Exact 0/1 placement matrix: e_b[k, c] = (c == b*n + k).
            # a_b @ e_b places the block at lane offset b*n (MXU "scatter",
            # avoids unaligned lane-offset stores entirely).
            e_b = (lane_ids == local_ids + b * n).astype(jnp.float32)
            strips.append(jnp.dot(a_b, e_b,
                                  preferred_element_type=jnp.float32))
        a = jnp.concatenate(strips, axis=0)                      # (m, m)

    deg = jnp.sum(a, axis=1, keepdims=True)      # (m, 1) in-degree, >= 1
    dinv = lax.rsqrt(deg)                        # no deg>0 guard needed
    # Row-scaled adjacency: a_rs[i, j] = dinv[i] * A[i, j].  Together with the
    # per-layer scaling of (h @ W) rows by dinv this realizes
    # D^{-1/2} A D^{-1/2} (h @ W) without any transposes.
    a_rs = (a * dinv).astype(matmul_dtype)

    def gcn(h, w, bias):
        xw = jnp.dot(h.astype(matmul_dtype), w.astype(matmul_dtype),
                     preferred_element_type=jnp.float32)         # (m, ghp)
        xw = (xw * dinv).astype(matmul_dtype)                    # dinv[j]*xw[j]
        agg = jnp.dot(a_rs, xw, preferred_element_type=jnp.float32)
        return jnp.maximum(agg + bias, 0.0)

    h = gcn(x_ref[...], w_in_ref[...], b_in_ref[...])            # layer_in
    acc = h
    for k in range(n_hidden):                                    # hidden layers
        h = gcn(h, w_h_ref[k], b_h_ref[k:k + 1, :])
        acc = acc + h
    h = gcn(h, w_out_ref[...], b_out_ref[...])                   # layer_out
    acc = acc + h

    out_ref[...] = acc * (1.0 / float(n_hidden + 2))             # lane-dense


# ------------------------------ wrapper ------------------------------------ #
def layer_averaged_gwr(aa_rep, rpa, params, *, block_batch=None,
                       matmul_dtype=jnp.float32):
    """aa_rep: [B, N, gi], rpa: [B, N, N] -> [B, N, go]."""
    B, N, gi = aa_rep.shape
    w_in, b_in, w_h, b_h, w_out, b_out = params
    gh = w_in.shape[1]
    go = w_out.shape[1]
    n_hidden = w_h.shape[0]
    assert gh == go, "torch.stack over layer outputs requires gh_dim == go_dim"

    # Graphs packed per grid step: target ~128 MXU rows (one v5e tile; also
    # fine on v6e/v7x).  Pass block_batch explicitly to target 256 on v6e/v7x.
    if block_batch is None:
        block_batch = 1
        for cand in range(1, B + 1):
            if B % cand == 0 and cand * N <= 128:
                block_batch = cand
    bb = block_batch
    assert B % bb == 0, "block_batch must divide the batch"
    m = bb * N
    grid = B // bb

    # Pad feature dims to a multiple of 128: lane-dense stores + full MXU width.
    ghp = _round_up(gh, 128)
    w_in_p = jnp.pad(w_in, ((0, 0), (0, ghp - gh)))
    b_in_p = jnp.pad(b_in, ((0, 0), (0, ghp - gh)))
    if n_hidden > 0:
        w_h_p = jnp.pad(w_h, ((0, 0), (0, ghp - gh), (0, ghp - gh)))
        b_h_p = jnp.pad(b_h, ((0, 0), (0, ghp - gh)))
    else:  # dummies (never read) so pallas_call sees no zero-sized operands
        w_h_p = jnp.zeros((1, ghp, ghp), w_in.dtype)
        b_h_p = jnp.zeros((1, ghp), w_in.dtype)
    w_out_p = jnp.pad(w_out, ((0, ghp - gh), (0, ghp - go)))
    b_out_p = jnp.pad(b_out, ((0, 0), (0, ghp - go)))
    nh = max(n_hidden, 1)

    # Free layout plumbing on the XLA side (kernel never reshapes values):
    x2d = aa_rep.reshape(B * N, gi)
    rpa_t = jnp.transpose(rpa, (0, 2, 1))   # rpa_t[b, i, j] != 0 <=> edge j->i

    kernel = functools.partial(_gwr_kernel, n_hidden=n_hidden, bb=bb, n=N,
                               matmul_dtype=matmul_dtype)

    def full(shape):
        zeros = (0,) * len(shape)
        return pl.BlockSpec(shape, lambda g: zeros)

    layers = n_hidden + 2
    flops = grid * (2 * m * gi * ghp
                    + 2 * m * ghp * ghp * (n_hidden + 1)
                    + 2 * m * m * ghp * layers)
    bytes_accessed = 4 * (x2d.size + rpa_t.size + B * N * ghp + w_in_p.size
                          + b_in_p.size + w_h_p.size + b_h_p.size
                          + w_out_p.size + b_out_p.size)

    out2d = pl.pallas_call(
        kernel,
        out_shape=jax.ShapeDtypeStruct((B * N, ghp), jnp.float32),
        grid_spec=pltpu.PrefetchScalarGridSpec(
            num_scalar_prefetch=0,
            grid=(grid,),
            in_specs=[
                pl.BlockSpec((m, gi), lambda g: (g, 0)),         # node features
                pl.BlockSpec((bb, N, N), lambda g: (g, 0, 0)),   # adjacency^T
                full((gi, ghp)),                                 # w_in
                full((1, ghp)),                                  # b_in
                full((nh, ghp, ghp)),                            # w_h
                full((nh, ghp)),                                 # b_h
                full((ghp, ghp)),                                # w_out
                full((1, ghp)),                                  # b_out
            ],
            out_specs=pl.BlockSpec((m, ghp), lambda g: (g, 0)),
        ),
        compiler_params=pltpu.CompilerParams(
            dimension_semantics=("parallel",)),
        cost_estimate=pl.CostEstimate(flops=int(flops),
                                      transcendentals=int(grid * m),
                                      bytes_accessed=int(bytes_accessed)),
    )(x2d, rpa_t, w_in_p, b_in_p, w_h_p, b_h_p, w_out_p, b_out_p)

    # TODO(synk): for production-scale N on v7x (64 MiB VMEM), tile the
    # aggregation over a second "arbitrary" grid axis on N and set
    # vmem_limit_bytes instead of loading the whole (bb, N, N) adjacency block.

    return out2d.reshape(B, N, ghp)[:, :, :go]


# ------------------------- pure-JAX reference ------------------------------ #
def _reference(aa_rep, rpa, params):
    w_in, b_in, w_h, b_h, w_out, b_out = params
    B, N, _ = aa_rep.shape
    n_hidden = w_h.shape[0]

    def one(x, adj):
        eye = jnp.eye(N, dtype=jnp.float32)
        a = jnp.where((adj.T != 0) & (eye == 0), 1.0, 0.0) + eye
        deg = a.sum(axis=1, keepdims=True)          # in-degree (incl. self loop)
        dinv = lax.rsqrt(deg)
        a_rs = a * dinv                             # D^{-1/2} A

        def gcn(h, w, b):
            # == relu(D^{-1/2} A D^{-1/2} (h @ w) + b)
            return jnp.maximum(a_rs @ ((h @ w) * dinv) + b, 0.0)

        h = gcn(x, w_in, b_in)
        outs = [h]
        for k in range(n_hidden):
            h = gcn(h, w_h[k], b_h[k:k + 1])
            outs.append(h)
        h = gcn(h, w_out, b_out)
        outs.append(h)
        return jnp.mean(jnp.stack(outs, 0), axis=0)

    return jax.vmap(one)(aa_rep, rpa)


# -------------------------------- main -------------------------------------- #
if __name__ == "__main__":
    # Small synthetic config consistent with the module:
    #   gi_dim=8, args.gh_dim=args.go_dim=32, args.g_layers=3 (-> 1 hidden layer)
    B, N = 2, 16
    gi_dim, gh_dim, go_dim = 8, 32, 32
    g_layers = 3
    n_hidden = g_layers - 2

    key = jax.random.PRNGKey(0)
    k_aa, k_rpa, k0, k1, k2, k3, k4, k5 = jax.random.split(key, 8)

    aa_rep = jax.random.normal(k_aa, (B, N, gi_dim), dtype=jnp.float32)
    rpa = (jax.random.uniform(k_rpa, (B, N, N)) > 0.6).astype(jnp.float32)

    # Deterministic parameter init (synthetic; no checkpoint).
    w_in = 0.1 * jax.random.normal(k0, (gi_dim, gh_dim), dtype=jnp.float32)
    b_in = 0.1 * jax.random.normal(k1, (1, gh_dim), dtype=jnp.float32)
    w_h = 0.1 * jax.random.normal(k2, (n_hidden, gh_dim, gh_dim), dtype=jnp.float32)
    b_h = 0.1 * jax.random.normal(k3, (n_hidden, gh_dim), dtype=jnp.float32)
    w_out = 0.1 * jax.random.normal(k4, (gh_dim, go_dim), dtype=jnp.float32)
    b_out = 0.1 * jax.random.normal(k5, (1, go_dim), dtype=jnp.float32)
    params = (w_in, b_in, w_h, b_h, w_out, b_out)

    ref = jax.block_until_ready(_reference(aa_rep, rpa, params))

    # f32 MXU path: tight check against the pure-JAX reference.
    out = jax.block_until_ready(layer_averaged_gwr(aa_rep, rpa, params))
    assert out.shape == (B, N, go_dim)
    assert jnp.allclose(out, ref, atol=1e-5, rtol=1e-4), "f32 mismatch vs reference"

    # bf16-input MXU path (v6e/v7x optimization): f32 accumulation, looser tol.
    out_bf16 = jax.block_until_ready(
        layer_averaged_gwr(aa_rep, rpa, params, matmul_dtype=jnp.bfloat16))
    assert jnp.allclose(out_bf16, ref, atol=2e-2, rtol=2e-2), "bf16 mismatch vs reference"

    print("KERNEL_OK")
</pallas_src>

<mosaic_0001>
module attributes {stable_mosaic.version = 11 : i64} {
  func.func @_gwr_kernel(%arg0: i32, %arg1: memref<32x8xf32, #tpu.memory_space<vmem>>, %arg2: memref<2x16x16xf32, #tpu.memory_space<vmem>>, %arg3: memref<8x128xf32, #tpu.memory_space<vmem>>, %arg4: memref<1x128xf32, #tpu.memory_space<vmem>>, %arg5: memref<1x128x128xf32, #tpu.memory_space<vmem>>, %arg6: memref<1x128xf32, #tpu.memory_space<vmem>>, %arg7: memref<128x128xf32, #tpu.memory_space<vmem>>, %arg8: memref<1x128xf32, #tpu.memory_space<vmem>>, %arg9: memref<32x128xf32, #tpu.memory_space<vmem>>) attributes {dimension_semantics = [#tpu.dimension_semantics<parallel>], iteration_bounds = array<i64: 1>, scalar_prefetch = 0 : i64, scratch_operands = 0 : i64, tpu.core_type = #tpu.core_type<tc>, window_params = [{transform_indices = @transform_0, window_bounds = array<i64: 32, 8>}, {transform_indices = @transform_1, window_bounds = array<i64: 2, 16, 16>}, {pipeline_mode = #tpu.pipeline_mode<synchronous>, transform_indices = @transform_2, window_bounds = array<i64: 8, 128>}, {pipeline_mode = #tpu.pipeline_mode<synchronous>, transform_indices = @transform_3, window_bounds = array<i64: 1, 128>}, {pipeline_mode = #tpu.pipeline_mode<synchronous>, transform_indices = @transform_4, window_bounds = array<i64: 1, 128, 128>}, {pipeline_mode = #tpu.pipeline_mode<synchronous>, transform_indices = @transform_5, window_bounds = array<i64: 1, 128>}, {pipeline_mode = #tpu.pipeline_mode<synchronous>, transform_indices = @transform_6, window_bounds = array<i64: 128, 128>}, {pipeline_mode = #tpu.pipeline_mode<synchronous>, transform_indices = @transform_7, window_bounds = array<i64: 1, 128>}, {transform_indices = @transform_8, window_bounds = array<i64: 32, 128>}]} {
    %0 = tpu.iota {dimensions = array<i32: 0>} : vector<16x16xi32>
    %1 = tpu.iota {dimensions = array<i32: 1>} : vector<16x16xi32>
    %2 = arith.cmpi eq, %0, %1 : vector<16x16xi32>
    %3 = tpu.iota {dimensions = array<i32: 1>} : vector<16x32xi32>
    %4 = tpu.iota {dimensions = array<i32: 0>} : vector<16x32xi32>
    %c0 = arith.constant 0 : index
    %c0_0 = arith.constant 0 : index
    %c0_1 = arith.constant 0 : index
    %5 = vector.load %arg2[%c0, %c0_0, %c0_1] : memref<2x16x16xf32, #tpu.memory_space<vmem>>, vector<1x16x16xf32>
    %6 = vector.shape_cast %5 : vector<1x16x16xf32> to vector<16x16xf32>
    %cst = arith.constant 0.000000e+00 : f32
    %7 = vector.broadcast %cst : f32 to vector<16x16xf32>
    %8 = arith.cmpf one, %6, %7 : vector<16x16xf32>
    %9 = arith.ori %2, %8 : vector<16x16xi1>
    %cst_2 = arith.constant 1.000000e+00 : f32
    %cst_3 = arith.constant 0.000000e+00 : f32
    %10 = vector.broadcast %cst_2 : f32 to vector<16x16xf32>
    %11 = vector.broadcast %cst_3 : f32 to vector<16x16xf32>
    %12 = arith.select %9, %10, %11 : vector<16x16xi1>, vector<16x16xf32>
    %c0_i32 = arith.constant 0 : i32
    %13 = vector.broadcast %c0_i32 : i32 to vector<16x32xi32>
    %14 = arith.addi %4, %13 : vector<16x32xi32>
    %15 = arith.cmpi eq, %3, %14 : vector<16x32xi32>
    %16 = arith.extui %15 : vector<16x32xi1> to vector<16x32xi32>
    %17 = arith.sitofp %16 : vector<16x32xi32> to vector<16x32xf32>
    %cst_4 = arith.constant dense<0.000000e+00> : vector<16x32xf32>
    %18 = tpu.matmul %12, %17, %cst_4 {dimension_numbers = #tpu.dot_dimension_numbers<[1], [0], [0], [1], [0, 0, 1, 1], [], []>} : vector<16x16xf32>, vector<16x32xf32>, vector<16x32xf32> -> vector<16x32xf32>
    %c1 = arith.constant 1 : index
    %c0_5 = arith.constant 0 : index
    %c0_6 = arith.constant 0 : index
    %19 = vector.load %arg2[%c1, %c0_5, %c0_6] : memref<2x16x16xf32, #tpu.memory_space<vmem>>, vector<1x16x16xf32>
    %20 = vector.shape_cast %19 : vector<1x16x16xf32> to vector<16x16xf32>
    %cst_7 = arith.constant 0.000000e+00 : f32
    %21 = vector.broadcast %cst_7 : f32 to vector<16x16xf32>
    %22 = arith.cmpf one, %20, %21 : vector<16x16xf32>
    %23 = arith.ori %2, %22 : vector<16x16xi1>
    %cst_8 = arith.constant 1.000000e+00 : f32
    %cst_9 = arith.constant 0.000000e+00 : f32
    %24 = vector.broadcast %cst_8 : f32 to vector<16x16xf32>
    %25 = vector.broadcast %cst_9 : f32 to vector<16x16xf32>
    %26 = arith.select %23, %24, %25 : vector<16x16xi1>, vector<16x16xf32>
    %c16_i32 = arith.constant 16 : i32
    %27 = vector.broadcast %c16_i32 : i32 to vector<16x32xi32>
    %28 = arith.addi %4, %27 : vector<16x32xi32>
    %29 = arith.cmpi eq, %3, %28 : vector<16x32xi32>
    %30 = arith.extui %29 : vector<16x32xi1> to vector<16x32xi32>
    %31 = arith.sitofp %30 : vector<16x32xi32> to vector<16x32xf32>
    %cst_10 = arith.constant dense<0.000000e+00> : vector<16x32xf32>
    %32 = tpu.matmul %26, %31, %cst_10 {dimension_numbers = #tpu.dot_dimension_numbers<[1], [0], [0], [1], [0, 0, 1, 1], [], []>} : vector<16x16xf32>, vector<16x32xf32>, vector<16x32xf32> -> vector<16x32xf32>
    %33 = tpu.concatenate %18, %32 in 0 : vector<16x32xf32>, vector<16x32xf32> -> vector<32x32xf32>
    %cst_11 = arith.constant dense<0.000000e+00> : vector<32xf32>
    %34 = vector.multi_reduction <add>, %33, %cst_11 [1] : vector<32x32xf32> to vector<32xf32>
    %35 = vector.shape_cast %34 : vector<32xf32> to vector<32x1xf32>
    %36 = math.rsqrt %35 : vector<32x1xf32>
    %37 = vector.broadcast %36 : vector<32x1xf32> to vector<32x32xf32>
    %38 = arith.mulf %33, %37 : vector<32x32xf32>
    %c0_12 = arith.constant 0 : index
    %c0_13 = arith.constant 0 : index
    %39 = vector.load %arg1[%c0_12, %c0_13] : memref<32x8xf32, #tpu.memory_space<vmem>>, vector<32x8xf32>
    %c0_14 = arith.constant 0 : index
    %c0_15 = arith.constant 0 : index
    %40 = vector.load %arg3[%c0_14, %c0_15] : memref<8x128xf32, #tpu.memory_space<vmem>>, vector<8x128xf32>
    %c0_16 = arith.constant 0 : index
    %c0_17 = arith.constant 0 : index
    %41 = vector.load %arg4[%c0_16, %c0_17] : memref<1x128xf32, #tpu.memory_space<vmem>>, vector<1x128xf32>
    %cst_18 = arith.constant dense<0.000000e+00> : vector<32x128xf32>
    %42 = tpu.matmul %39, %40, %cst_18 {dimension_numbers = #tpu.dot_dimension_numbers<[1], [0], [0], [1], [0, 0, 1, 1], [], []>} : vector<32x8xf32>, vector<8x128xf32>, vector<32x128xf32> -> vector<32x128xf32>
    %43 = vector.broadcast %36 : vector<32x1xf32> to vector<32x128xf32>
    %44 = arith.mulf %42, %43 : vector<32x128xf32>
    %cst_19 = arith.constant dense<0.000000e+00> : vector<32x128xf32>
    %45 = tpu.matmul %38, %44, %cst_19 {dimension_numbers = #tpu.dot_dimension_numbers<[1], [0], [0], [1], [0, 0, 1, 1], [], []>} : vector<32x32xf32>, vector<32x128xf32>, vector<32x128xf32> -> vector<32x128xf32>
    %46 = vector.broadcast %41 : vector<1x128xf32> to vector<32x128xf32>
    %47 = arith.addf %45, %46 : vector<32x128xf32>
    %cst_20 = arith.constant 0.000000e+00 : f32
    %48 = vector.broadcast %cst_20 : f32 to vector<32x128xf32>
    %49 = arith.maximumf %47, %48 : vector<32x128xf32>
    %c0_21 = arith.constant 0 : index
    %c0_22 = arith.constant 0 : index
    %c0_23 = arith.constant 0 : index
    %50 = vector.load %arg5[%c0_21, %c0_22, %c0_23] : memref<1x128x128xf32, #tpu.memory_space<vmem>>, vector<1x128x128xf32>
    %51 = vector.shape_cast %50 : vector<1x128x128xf32> to vector<128x128xf32>
    %c0_24 = arith.constant 0 : index
    %c0_25 = arith.constant 0 : index
    %52 = vector.load %arg6[%c0_24, %c0_25] : memref<1x128xf32, #tpu.memory_space<vmem>>, vector<1x128xf32>
    %cst_26 = arith.constant dense<0.000000e+00> : vector<32x128xf32>
    %53 = tpu.matmul %49, %51, %cst_26 {dimension_numbers = #tpu.dot_dimension_numbers<[1], [0], [0], [1], [0, 0, 1, 1], [], []>} : vector<32x128xf32>, vector<128x128xf32>, vector<32x128xf32> -> vector<32x128xf32>
    %54 = vector.broadcast %36 : vector<32x1xf32> to vector<32x128xf32>
    %55 = arith.mulf %53, %54 : vector<32x128xf32>
    %cst_27 = arith.constant dense<0.000000e+00> : vector<32x128xf32>
    %56 = tpu.matmul %38, %55, %cst_27 {dimension_numbers = #tpu.dot_dimension_numbers<[1], [0], [0], [1], [0, 0, 1, 1], [], []>} : vector<32x32xf32>, vector<32x128xf32>, vector<32x128xf32> -> vector<32x128xf32>
    %57 = vector.broadcast %52 : vector<1x128xf32> to vector<32x128xf32>
    %58 = arith.addf %56, %57 : vector<32x128xf32>
    %cst_28 = arith.constant 0.000000e+00 : f32
    %59 = vector.broadcast %cst_28 : f32 to vector<32x128xf32>
    %60 = arith.maximumf %58, %59 : vector<32x128xf32>
    %61 = arith.addf %49, %60 : vector<32x128xf32>
    %c0_29 = arith.constant 0 : index
    %c0_30 = arith.constant 0 : index
    %62 = vector.load %arg7[%c0_29, %c0_30] : memref<128x128xf32, #tpu.memory_space<vmem>>, vector<128x128xf32>
    %c0_31 = arith.constant 0 : index
    %c0_32 = arith.constant 0 : index
    %63 = vector.load %arg8[%c0_31, %c0_32] : memref<1x128xf32, #tpu.memory_space<vmem>>, vector<1x128xf32>
    %cst_33 = arith.constant dense<0.000000e+00> : vector<32x128xf32>
    %64 = tpu.matmul %60, %62, %cst_33 {dimension_numbers = #tpu.dot_dimension_numbers<[1], [0], [0], [1], [0, 0, 1, 1], [], []>} : vector<32x128xf32>, vector<128x128xf32>, vector<32x128xf32> -> vector<32x128xf32>
    %65 = vector.broadcast %36 : vector<32x1xf32> to vector<32x128xf32>
    %66 = arith.mulf %64, %65 : vector<32x128xf32>
    %cst_34 = arith.constant dense<0.000000e+00> : vector<32x128xf32>
    %67 = tpu.matmul %38, %66, %cst_34 {dimension_numbers = #tpu.dot_dimension_numbers<[1], [0], [0], [1], [0, 0, 1, 1], [], []>} : vector<32x32xf32>, vector<32x128xf32>, vector<32x128xf32> -> vector<32x128xf32>
    %68 = vector.broadcast %63 : vector<1x128xf32> to vector<32x128xf32>
    %69 = arith.addf %67, %68 : vector<32x128xf32>
    %cst_35 = arith.constant 0.000000e+00 : f32
    %70 = vector.broadcast %cst_35 : f32 to vector<32x128xf32>
    %71 = arith.maximumf %69, %70 : vector<32x128xf32>
    %72 = arith.addf %61, %71 : vector<32x128xf32>
    %cst_36 = arith.constant 0.333333343 : f32
    %73 = vector.broadcast %cst_36 : f32 to vector<32x128xf32>
    %74 = arith.mulf %72, %73 : vector<32x128xf32>
    %c0_37 = arith.constant 0 : index
    %c0_38 = arith.constant 0 : index
    %75 = vector.load %arg9[%c0_37, %c0_38] : memref<32x128xf32, #tpu.memory_space<vmem>>, vector<32x128xf32>
    tpu.vector_store %arg9[%c0_37, %c0_38], %74 {strides = array<i32>} : memref<32x128xf32, #tpu.memory_space<vmem>>, vector<32x128xf32>,
    return
  }
  func.func @transform_0(%arg0: i32) -> (i32, i32) {
    %c0_i32 = arith.constant 0 : i32
    %c0_i32_0 = arith.constant 0 : i32
    return %arg0, %c0_i32 : i32, i32
  }
  func.func @transform_1(%arg0: i32) -> (i32, i32, i32) {
    %c0_i32 = arith.constant 0 : i32
    %c0_i32_0 = arith.constant 0 : i32
    %c0_i32_1 = arith.constant 0 : i32
    return %arg0, %c0_i32, %c0_i32_0 : i32, i32, i32
  }
  func.func @transform_2(%arg0: i32) -> (i32, i32) {
    %c0_i32 = arith.constant 0 : i32
    %c0_i32_0 = arith.constant 0 : i32
    %c0_i32_1 = arith.constant 0 : i32
    return %c0_i32, %c0_i32_0 : i32, i32
  }
  func.func @transform_3(%arg0: i32) -> (i32, i32) {
    %c0_i32 = arith.constant 0 : i32
    %c0_i32_0 = arith.constant 0 : i32
    %c0_i32_1 = arith.constant 0 : i32
    return %c0_i32, %c0_i32_0 : i32, i32
  }
  func.func @transform_4(%arg0: i32) -> (i32, i32, i32) {
    %c0_i32 = arith.constant 0 : i32
    %c0_i32_0 = arith.constant 0 : i32
    %c0_i32_1 = arith.constant 0 : i32
    %c0_i32_2 = arith.constant 0 : i32
    return %c0_i32, %c0_i32_0, %c0_i32_1 : i32, i32, i32
  }
  func.func @transform_5(%arg0: i32) -> (i32, i32) {
    %c0_i32 = arith.constant 0 : i32
    %c0_i32_0 = arith.constant 0 : i32
    %c0_i32_1 = arith.constant 0 : i32
    return %c0_i32, %c0_i32_0 : i32, i32
  }
  func.func @transform_6(%arg0: i32) -> (i32, i32) {
    %c0_i32 = arith.constant 0 : i32
    %c0_i32_0 = arith.constant 0 : i32
    %c0_i32_1 = arith.constant 0 : i32
    return %c0_i32, %c0_i32_0 : i32, i32
  }
  func.func @transform_7(%arg0: i32) -> (i32, i32) {
    %c0_i32 = arith.constant 0 : i32
    %c0_i32_0 = arith.constant 0 : i32
    %c0_i32_1 = arith.constant 0 : i32
    return %c0_i32, %c0_i32_0 : i32, i32
  }
  func.func @transform_8(%arg0: i32) -> (i32, i32) {
    %c0_i32 = arith.constant 0 : i32
    %c0_i32_0 = arith.constant 0 : i32
    return %arg0, %c0_i32 : i32, i32
  }
}

</mosaic_0001>

<bundles_post_ra>
// kernel: tpu_custom_call.1
= control target key start
LH: loop header
LB: loop body
LE: loop exit
PB: predicated region body
PF: predicated region fallthrough
CT: control target
= control target key end

     0   :  { %13 = vsyncpa [#allocation3], 0  ;;  %s1602_s0 = inlined_call_operand.vmem [shape: f32[32,8], index: 0, kind: input, shape index: {}]   ;;  %s1603_s1 = inlined_call_operand.vmem [shape: f32[2,16,16], index: 1, kind: input, shape index: {}]   ;;  %s1604_s2 = inlined_call_operand.vmem [shape: f32[8,128], index: 2, kind: input, shape index: {}]   ;;  %s1605_s3 = inlined_call_operand.vmem [shape: f32[1,128], index: 3, kind: input, shape index: {}]   ;;  %s1606_s4 = inlined_call_operand.hbm [shape: f32[1,128,128], index: 4, kind: input, shape index: {}]   ;;  %s1607_s5 = inlined_call_operand.vmem [shape: f32[1,128], index: 5, kind: input, shape index: {}]   ;;  %s1608_s6 = inlined_call_operand.hbm [shape: f32[128,128], index: 6, kind: input, shape index: {}]   ;;  %s1609_s7 = inlined_call_operand.vmem [shape: f32[1,128], index: 7, kind: input, shape index: {}]   ;;  %s1610_s8 = inlined_call_operand.hbm [shape: f32[32,128], index: 8, kind: output, shape index: {}]  }
   0x1   :  { %14 = vsyncpa [#allocation6], 0 }
   0x2   :  { %15 = vsyncpa [#allocation4], 0  ;;  %s1364_s27 = smov [#allocation2]   ;;  %s1292_s9 = scalar_lea.hbm %s1606_s4, 2048 }
   0x3   :  { %s29_s28 = sshll.u32 %s1364_s27, 4  ;;  %p1293_p0 = scmp.ne.s32.totalorder %s1606_s4, %s1292_s9  ;;  %s30_s28 = int_to_ptr.vmem [resolvable:$true] %s29_s28 }
   0x4   :  { %p1296_p1 = scmp.lt.u32.totalorder %s1292_s9, %s1606_s4 }
   0x6   :  { %p1298_p2 = pnand %p1296_p1, %p1293_p0 }
   0x8   :  { %1301 = shalt.err (!%p1298_p2)
}
   0x9   :  { %s1302_s14 = scalar_lea.vmem %s30_s28, 2048  ;;  %p1307_p4 = scmp.lt.s32.totalorder %s30_s28, %s30_s28 }
   0xa   :  { %p1303_p3 = scmp.ne.s32.totalorder %s30_s28, %s1302_s14  ;;  %p1308_p5 = scmp.lt.s32.totalorder %s1302_s14, %s1302_s14 }
   0xc   :  { %p1309_p6 = por %p1308_p5, %p1307_p4 }
   0xe   :  { %p1310_p7 = pnand %p1309_p6, %p1303_p3 }
  0x10   :  { %1313 = shalt.err (!%p1310_p7)
}
  0x11   :  { %s1365_s15 = smov 128   ;;  %s1366_s16 = smov 8  }
  0x12   :  { %35 = dma.hbm_to_vmem [thread:$0]  %s1606_s4, 2048, %s30_s28, [#allocation3], %s1365_s15, %s1365_s15, %s1366_s16  }
  0x13   :  { %s1367_s19 = smov [#allocation5]   ;;  %s1314_s23 = scalar_lea.hbm %s1608_s6, 2048 }
  0x14   :  { %s43_s20 = sshll.u32 %s1367_s19, 4  ;;  %p1315_p8 = scmp.ne.s32.totalorder %s1608_s6, %s1314_s23  ;;  %s44_s20 = int_to_ptr.vmem [resolvable:$true] %s43_s20 }
  0x15   :  { %p1318_p9 = scmp.lt.u32.totalorder %s1314_s23, %s1608_s6 }
  0x17   :  { %p1320_p10 = pnand %p1318_p9, %p1315_p8 }
  0x19   :  { %1323 = shalt.err (!%p1320_p10)
}
  0x1a   :  { %s1324_s29 = scalar_lea.vmem %s44_s20, 2048  ;;  %p1329_p12 = scmp.lt.s32.totalorder %s44_s20, %s44_s20 }
  0x1b   :  { %p1325_p11 = scmp.ne.s32.totalorder %s44_s20, %s1324_s29  ;;  %p1330_p13 = scmp.lt.s32.totalorder %s1324_s29, %s1324_s29 }
  0x1d   :  { %p1331_p0 = por %p1330_p13, %p1329_p12 }
  0x1f   :  { %p1332_p1 = pnand %p1331_p0, %p1325_p11 }
  0x21   :  { %1335 = shalt.err (!%p1332_p1)
}
  0x22   :  { %49 = dma.hbm_to_vmem [thread:$0]  %s1608_s6, 2048, %s44_s20, [#allocation6], %s1365_s15, %s1365_s15, %s1366_s16  }
  0x23   :  { %1358 = dma.done.wait [#allocation3], 2048  }
  0x24   :  { %1359 = vsyncadd [#allocation3], 4294965248 }
  0x25   :  { %1360 = dma.done.wait [#allocation6], 2048  }
  0x26   :  { %1361 = vsyncadd [#allocation6], 4294965248  ;;  %v58_v0 = vlaneseq  ;;  %v65_v6 = vld [vmem:[%s1603_s1] sm:$0xff]  ;;  %v66_v7 = vld [vmem:[%s1603_s1 + $0x8] sm:$0xff]  ;;  %v1368_v8 = vmov 1.0|1.0  }
  0x27   :  { %vm67_vm6 = vcmp.ne.f32.partialorder %v65_v6, 0.0  ;;  %vm68_vm8 = vcmp.ne.f32.partialorder %v66_v7, 0.0  ;;  %v937_v9 = vld [vmem:[%s1603_s1 + $0x10] sm:$0xff]  ;;  %v938_v10 = vld [vmem:[%s1603_s1 + $0x18] sm:$0xff]  ;;  %v284_v11 = vld [vmem:[%s1604_s2] sm:$0xff]  ;;  %vm79_vm10 = vcmask 130048  }
  0x28   :  { %v59_v1 = vshrl.u32 %v58_v0, 7  ;;  %v62_v2 = vand.u32 127, %v58_v0  ;;  %vm164_vm11 = vcmp.ne.f32.partialorder %v937_v9, 0.0  ;;  %vm165_vm13 = vcmp.ne.f32.partialorder %v938_v10, 0.0  ;;  %v280_v15 = vld [vmem:[%s1602_s0] sm:$0xff]  ;;  %v281_v18 = vld [vmem:[%s1602_s0 + $0x8] sm:$0xff] }
  0x29   :  { %v1369_v12 = vmov 0.0   ;;  %v282_v19 = vld [vmem:[%s1602_s0 + $0x10] sm:$0xff]  ;;  %v283_v20 = vld [vmem:[%s1602_s0 + $0x18] sm:$0xff]  ;;  %v495_v33 = vld [vmem:[#allocation2] sm:$0xff] }
  0x2a   :  { %v60_v3 = vadd.s32 8, %v59_v1  ;;  %vm73_vm0 = vcmp.eq.s32.totalorder %v62_v2, %v59_v1  ;;  %v170_v4 = vadd.s32 16, %v59_v1  ;;  %vm63_vm4 = vcmp.eq.s32.totalorder %v59_v1, %v62_v2  ;;  %v496_v34 = vld [vmem:[#allocation2 + $0x8] sm:$0xff]  ;;  %v497_v35 = vld [vmem:[#allocation2 + $0x10] sm:$0xff]  ;;  %v498_v37 = vld [vmem:[#allocation2 + $0x18] sm:$0xff] }
  0x2b   :  { %vm69_vm12 = vmor %vm63_vm4, %vm67_vm6  ;;  %v1197_v36 = vpack.c.bf16 %v496_v34, %v495_v33  ;;  %v1201_v38 = vpack.c.bf16 %v498_v37, %v497_v35  ;;  %v499_v39 = vld [vmem:[#allocation2 + $0x20] sm:$0xff]  ;;  %v500_v40 = vld [vmem:[#allocation2 + $0x28] sm:$0xff] }
  0x2c   :  { %vm74_vm1 = vcmp.eq.s32.totalorder %v62_v2, %v60_v3  ;;  %v171_v5 = vadd.s32 16, %v60_v3  ;;  %vm172_vm2 = vcmp.eq.s32.totalorder %v62_v2, %v170_v4  ;;  %vm64_vm7 = vcmp.eq.s32.totalorder %v60_v3, %v62_v2  ;;  %vm166_vm15 = vmor %vm63_vm4, %vm164_vm11  ;;  %v501_v42 = vld [vmem:[#allocation2 + $0x30] sm:$0xff]  ;;  %v502_v43 = vld [vmem:[#allocation2 + $0x38] sm:$0xff] }
  0x2d   :  { %vm1181_vm3 = vmpackc.low %vm74_vm1, %vm73_vm0  ;;  %v71_v13 = vsel %vm69_vm12, 1.0, %v1369_v12  ;;  %vm286_vm0 = vcmask 64512   ;;  %v168_v16 = vsel %vm166_vm15, 1.0, %v1369_v12  ;;  %v1205_v41 = vpack.c.bf16 %v500_v40, %v499_v39  ;;  %v503_v45 = vld [vmem:[#allocation2 + $0x40] sm:$0xff]  ;;  %v504_v46 = vld [vmem:[#allocation2 + $0x48] sm:$0xff] }
  0x2e   :  { %1182 = vmatprep.subr.msk.bf16.mxu0 %vm1181_vm3, %v1368_v8  ;;  %vm173_vm5 = vcmp.eq.s32.totalorder %v62_v2, %v171_v5  ;;  %vm70_vm14 = vmor %vm64_vm7, %vm68_vm8  ;;  %1045 = vmatprep.mubr.msk.f32.mxu0 %vm79_vm10, %v71_v13  ;;  %v1209_v44 = vpack.c.bf16 %v502_v43, %v501_v42  ;;  %v1213_v47 = vpack.c.bf16 %v504_v46, %v503_v45  ;;  %v505_v48 = vld [vmem:[#allocation2 + $0x50] sm:$0xff]  ;;  %v506_v49 = vld [vmem:[#allocation2 + $0x58] sm:$0xff] }
  0x2f   :  { %1184 = vmatpush3.bf16.msk.msra.mxu0 %vm1181_vm3, %v1368_v8  ;;  %vm1185_vm9 = vmpackc.low %vm173_vm5, %vm172_vm2  ;;  %v72_v14 = vsel %vm70_vm14, 1.0, %v1369_v12  ;;  %1052 = vmatprep.mubr.msk.f32.mxu1 %vm79_vm10, %v168_v16  ;;  %vm259_vm2 = vcmask 261120   ;;  %v1217_v50 = vpack.c.bf16 %v506_v49, %v505_v48  ;;  %v507_v51 = vld [vmem:[#allocation2 + $0x60] sm:$0xff]  ;;  %v508_v52 = vld [vmem:[#allocation2 + $0x68] sm:$0xff] }
  0x30   :  { %1186 = vmatprep.subr.msk.bf16.mxu1 %vm1185_vm9, %v1368_v8  ;;  %1055 = vmatprep.subr.mxu0 %v284_v11  ;;  %vm167_vm1 = vmor %vm64_vm7, %vm165_vm13  ;;  %v1221_v53 = vpack.c.bf16 %v508_v52, %v507_v51  ;;  %v510_v9 = vld [vmem:[#allocation2 + $0x78] sm:$0xff]  ;;  %v701_v33 = vld [vmem:[#allocation5 + $0x8] sm:$0xff] }
  0x31   :  { %1188 = vmatpush3.bf16.msk.msra.mxu1 %vm1185_vm9, %v1368_v8  ;;  %v169_v17 = vsel %vm167_vm1, 1.0, %v1369_v12  ;;  %v509_v8 = vld [vmem:[#allocation2 + $0x70] sm:$0xff]  ;;  %v704_v40 = vld [vmem:[#allocation5 + $0x20] sm:$0xff] }
  0x32   :  { %1046 = vmatmul.mubr.msk.f32.vlgmr.msra.gmra.mrb[0].mxu0 %vm79_vm10, %v72_v14  ;;  %v1225_v10 = vpack.c.bf16 %v510_v9, %v509_v8  ;;  %v702_v37 = vld [vmem:[#allocation5 + $0x10] sm:$0xff]  ;;  %v708_v46 = vld [vmem:[#allocation5 + $0x40] sm:$0xff] }
  0x33   :  { %1056 = vmatpush3.msra.mxu0 %v284_v11  ;;  %1057 = vmatprep.mubr.msk.f32.mxu0 %vm286_vm0, %v280_v15  ;;  %v949_v11 = vld [vmem:[%s1605_s3] ss:$0 sm:$0xff]  ;;  %v706_v43 = vld [vmem:[#allocation5 + $0x30] sm:$0xff] }
  0x34   :  { %1053 = vmatmul.mubr.msk.f32.vlgmr.msra.gmra.mrb[0].mxu1 %vm79_vm10, %v169_v17  ;;  %1198 = vmatprep.subr.bf16.mxu0 %v1197_v36  ;;  %v710_v49 = vld [vmem:[#allocation5 + $0x50] sm:$0xff]  ;;  %v712_v52 = vld [vmem:[#allocation5 + $0x60] sm:$0xff] }
  0x36   :  { %1058 = vmatmul.mubr.msk.f32.vlgmr.msra.gmra.mrb[2].mxu0 %vm286_vm0, %v281_v18 }
  0x37   :  { %1060 = vmatprep.mubr.msk.f32.mxu0 %vm286_vm0, %v282_v19  ;;  %1200 = vmatpush3.bf16.msra.mxu0 %v1197_v36 }
  0x38   :  { %1202 = vmatprep.subr.bf16.mxu0 %v1201_v38 }
  0x3a   :  { %1061 = vmatmul.mubr.msk.f32.gmra.mrb[4].mxu0 %vm286_vm0, %v283_v20 }
  0x3b   :  { %1204 = vmatpush3.bf16.msra.mxu0 %v1201_v38  ;;  %v703_v38 = vld [vmem:[#allocation5 + $0x18] sm:$0xff] }
  0x3c   :  { %1206 = vmatprep.subr.bf16.mxu0 %v1205_v41  ;;  %v1241_v39 = vpack.c.bf16 %v703_v38, %v702_v37 }
  0x3f   :  { %1208 = vmatpush3.bf16.msra.mxu0 %v1205_v41  ;;  %v705_v41 = vld [vmem:[#allocation5 + $0x28] sm:$0xff] }
  0x40   :  { %1210 = vmatprep.subr.bf16.mxu0 %v1209_v44  ;;  %v1245_v42 = vpack.c.bf16 %v705_v41, %v704_v40 }
  0x43   :  { %1212 = vmatpush3.bf16.msra.mxu0 %v1209_v44  ;;  %v707_v44 = vld [vmem:[#allocation5 + $0x38] sm:$0xff] }
  0x44   :  { %1214 = vmatprep.subr.bf16.mxu0 %v1213_v47  ;;  %v1249_v45 = vpack.c.bf16 %v707_v44, %v706_v43 }
  0x47   :  { %1216 = vmatpush3.bf16.msra.mxu0 %v1213_v47  ;;  %v709_v47 = vld [vmem:[#allocation5 + $0x48] sm:$0xff] }
  0x48   :  { %1218 = vmatprep.subr.bf16.mxu0 %v1217_v50  ;;  %v1253_v48 = vpack.c.bf16 %v709_v47, %v708_v46 }
  0x4b   :  { %1220 = vmatpush3.bf16.msra.mxu0 %v1217_v50  ;;  %v711_v50 = vld [vmem:[#allocation5 + $0x58] sm:$0xff] }
  0x4c   :  { %1222 = vmatprep.subr.bf16.mxu0 %v1221_v53  ;;  %v1257_v51 = vpack.c.bf16 %v711_v50, %v710_v49 }
  0x4f   :  { %1224 = vmatpush3.bf16.msra.mxu0 %v1221_v53  ;;  %v713_v53 = vld [vmem:[#allocation5 + $0x68] sm:$0xff] }
  0x50   :  { %1226 = vmatprep.subr.bf16.mxu0 %v1225_v10 }
  0x53   :  { %1228 = vmatpush3.bf16.msra.mxu0 %v1225_v10 }
 0x105   :  { %v1483_v21 = vpop.f32.mrb[0].mxu0 }
 0x106   :  { %v152_v22 = vpop.f32.mrb[1].mxu0  ;;  %v263_v27 = vsel %vm259_vm2, %v1483_v21, 0.0 }
 0x107   :  { %v1485_v23 = vpop.f32.mrb[0].mxu1  ;;  %v260_v24 = vsel %vm259_vm2, %v152_v22, 0.0 }
 0x108   :  { %v1488_v25 = vpop.f32.mrb[1].mxu1  ;;  %261 = vadd.xlane.f32.xlu0 %v260_v24  ;;  %v269_v28 = vsel %vm259_vm2, %v1485_v23, 0.0 }
 0x109   :  { %v266_v26 = vsel %vm259_vm2, %v1488_v25, 0.0  ;;  %v1059_v29 = vpop.f32.mrb[2].mxu0 }
 0x10a   :  { %267 = vadd.xlane.f32.xlu1 %v266_v26  ;;  %v365_v30 = vpop.f32.mrb[3].mxu0 }
 0x10c   :  { %264 = vadd.xlane.f32.xlu0 %v263_v27 }
 0x10d   :  { %v1062_v31 = vpop.f32.mrb[4].mxu0 }
 0x10e   :  { %270 = vadd.xlane.f32.xlu1 %v269_v28  ;;  %v375_v32 = vpop.f32.mrb[5].mxu0 }
 0x195   :  { %v262_v54 = vpop.xlane.xlu0 %261 }
 0x196   :  { %1284 = vrsqrt.f32 %v262_v54  ;;  %v1261_v54 = vpack.c.bf16 %v713_v53, %v712_v52 }
 0x197   :  { %v268_v55 = vpop.xlane.xlu1 %267 }
 0x198   :  { %1286 = vrsqrt.f32 %v268_v55  ;;  %v714_v55 = vld [vmem:[#allocation5 + $0x70] sm:$0xff] }
 0x199   :  { %v265_v56 = vpop.xlane.xlu0 %264 }
 0x19a   :  { %1288 = vrsqrt.f32 %v265_v56  ;;  %v715_v56 = vld [vmem:[#allocation5 + $0x78] sm:$0xff] }
 0x19b   :  { %v271_v57 = vpop.xlane.xlu1 %270 }
 0x19c   :  { %1290 = vrsqrt.f32 %v271_v57  ;;  %v1265_v57 = vpack.c.bf16 %v715_v56, %v714_v55 }
 0x1a0   :  { %v1496_v58 = vpop.eup %1284 }
 0x1a1   :  { %v276_v59 = vmul.f32 %v1496_v58, %v152_v22  ;;  %v384_v63 = vmul.f32 %v1496_v58, %v365_v30 }
 0x1a2   :  { %v1499_v60 = vpop.eup %1286 }
 0x1a3   :  { %1071 = vmatprep.mubr.msk.f32.mxu1 %vm259_vm2, %v276_v59  ;;  %v386_v3 = vmul.f32 %v1499_v60, %v375_v32  ;;  %v1516_v6 = vmul.f32 %v1499_v60, %v1488_v25  ;;  %v700_v32 = vld [vmem:[#allocation5] sm:$0xff] }
 0x1a4   :  { %v1502_v61 = vpop.eup %1288  ;;  %v1237_v36 = vpack.c.bf16 %v701_v33, %v700_v32 }
 0x1a5   :  { %v385_v62 = vmul.f32 %v1502_v61, %v1059_v29  ;;  %v1512_v5 = vmul.f32 %v1502_v61, %v1483_v21 }
 0x1a6   :  { %v1506_v0 = vpop.eup %1290 }
 0x1a7   :  { %v1189_v1 = vpack.c.bf16 %v385_v62, %v384_v63  ;;  %v387_v2 = vmul.f32 %v1506_v0, %v1062_v31  ;;  %v1524_v7 = vmul.f32 %v1506_v0, %v1485_v23 }
 0x1a9   :  { %v1193_v4 = vpack.c.bf16 %v387_v2, %v386_v3  ;;  %1190 = vmatprep.subr.bf16.mxu1 %v1189_v1 }
 0x1aa   :  { %1192 = vmatpush3.bf16.msra.mxu1 %v1189_v1 }
 0x1ab   :  { %1194 = vmatprep.subr.bf16.mxu1 %v1193_v4 }
 0x1ae   :  { %1196 = vmatpush3.bf16.msra.mxu1 %v1193_v4 }
 0x1b1   :  { %1072 = vmatmul.mubr.msk.f32.vlgmr.msra.gmra.mrb[2].mxu1 %vm259_vm2, %v1512_v5 }
 0x1b2   :  { %1074 = vmatprep.mubr.msk.f32.mxu1 %vm259_vm2, %v1516_v6 }
 0x1b5   :  { %1075 = vmatmul.mubr.msk.f32.gmra.mrb[4].mxu1 %vm259_vm2, %v1524_v7 }
 0x1b6   :  { %1123 = vmatprep.mubr.msk.f32.mxu1 %vm259_vm2, %v276_v59 }
 0x284   :  { %v1073_v12 = vpop.f32.mrb[2].mxu1 }
 0x285   :  { %v1532_v13 = vadd.f32 %v1073_v12, %v949_v11  ;;  %v472_v14 = vpop.f32.mrb[3].mxu1 }
 0x286   :  { %v1534_v15 = vadd.f32 %v949_v11, %v472_v14 }
 0x287   :  { %v492_v18 = vmax.f32 %v1532_v13, 0.0 }
 0x288   :  { %v491_v16 = vmax.f32 %v1534_v15, 0.0  ;;  %v1076_v17 = vpop.f32.mrb[4].mxu1 }
 0x289   :  { %v1538_v19 = vadd.f32 %v1076_v17, %v949_v11  ;;  %v482_v20 = vpop.f32.mrb[5].mxu1 }
 0x28a   :  { %v1540_v21 = vadd.f32 %v949_v11, %v482_v20  ;;  %1109 = vmatprep.mubr.f32.mxu0 %v491_v16 }
 0x28b   :  { %1110 = vmatmul.mubr.f32.vlgmr.msra.gmra.mrb[6].mxu0 %v492_v18  ;;  %v494_v23 = vmax.f32 %v1538_v19, 0.0 }
 0x28c   :  { %v493_v22 = vmax.f32 %v1540_v21, 0.0 }
 0x28e   :  { %1112 = vmatprep.mubr.f32.mxu0 %v493_v22 }
 0x28f   :  { %1113 = vmatmul.mubr.f32.gmra.mrb[8].mxu0 %v494_v23 }
 0x290   :  { %1175 = vmatprep.mubr.msk.f32.mxu0 %vm259_vm2, %v276_v59  ;;  %v954_v59 = vld [vmem:[%s1607_s5] ss:$0 sm:$0xff] }
 0x35e   :  { %v1111_v24 = vpop.f32.mrb[6].mxu0 }
 0x35f   :  { %v598_v25 = vmul.f32 %v1502_v61, %v1111_v24  ;;  %v578_v26 = vpop.f32.mrb[7].mxu0 }
 0x360   :  { %v597_v27 = vmul.f32 %v1496_v58, %v578_v26 }
 0x362   :  { %v1229_v28 = vpack.c.bf16 %v598_v25, %v597_v27  ;;  %v1114_v29 = vpop.f32.mrb[8].mxu0 }
 0x363   :  { %v600_v30 = vmul.f32 %v1506_v0, %v1114_v29  ;;  %v588_v31 = vpop.f32.mrb[9].mxu0 }
 0x364   :  { %v599_v34 = vmul.f32 %v1499_v60, %v588_v31  ;;  %1230 = vmatprep.subr.bf16.mxu1 %v1229_v28 }
 0x365   :  { %1232 = vmatpush3.bf16.msra.mxu1 %v1229_v28 }
 0x366   :  { %v1233_v35 = vpack.c.bf16 %v600_v30, %v599_v34 }
 0x368   :  { %1234 = vmatprep.subr.bf16.mxu1 %v1233_v35 }
 0x369   :  { %1236 = vmatpush3.bf16.msra.mxu1 %v1233_v35 }
 0x36a   :  { %1238 = vmatprep.subr.bf16.mxu1 %v1237_v36 }
 0x36c   :  { %1124 = vmatmul.mubr.msk.f32.vlgmr.msra.gmra.mrb[6].mxu1 %vm259_vm2, %v1512_v5 }
 0x36d   :  { %1126 = vmatprep.mubr.msk.f32.mxu1 %vm259_vm2, %v1516_v6  ;;  %1240 = vmatpush3.bf16.msra.mxu1 %v1237_v36 }
 0x36e   :  { %1242 = vmatprep.subr.bf16.mxu1 %v1241_v39 }
 0x370   :  { %1127 = vmatmul.mubr.msk.f32.gmra.mrb[8].mxu1 %vm259_vm2, %v1524_v7 }
 0x371   :  { %1244 = vmatpush3.bf16.msra.mxu1 %v1241_v39 }
 0x372   :  { %1246 = vmatprep.subr.bf16.mxu1 %v1245_v42 }
 0x375   :  { %1248 = vmatpush3.bf16.msra.mxu1 %v1245_v42 }
 0x376   :  { %1250 = vmatprep.subr.bf16.mxu1 %v1249_v45 }
 0x379   :  { %1252 = vmatpush3.bf16.msra.mxu1 %v1249_v45 }
 0x37a   :  { %1254 = vmatprep.subr.bf16.mxu1 %v1253_v48 }
 0x37d   :  { %1256 = vmatpush3.bf16.msra.mxu1 %v1253_v48 }
 0x37e   :  { %1258 = vmatprep.subr.bf16.mxu1 %v1257_v51 }
 0x381   :  { %1260 = vmatpush3.bf16.msra.mxu1 %v1257_v51 }
 0x382   :  { %1262 = vmatprep.subr.bf16.mxu1 %v1261_v54 }
 0x385   :  { %1264 = vmatpush3.bf16.msra.mxu1 %v1261_v54 }
 0x386   :  { %1266 = vmatprep.subr.bf16.mxu1 %v1265_v57 }
 0x389   :  { %1268 = vmatpush3.bf16.msra.mxu1 %v1265_v57 }
 0x43f   :  { %v1125_v62 = vpop.f32.mrb[6].mxu1 }
 0x440   :  { %v679_v63 = vadd.f32 %v1125_v62, %v954_v59  ;;  %v673_v1 = vpop.f32.mrb[7].mxu1 }
 0x441   :  { %v674_v2 = vadd.f32 %v954_v59, %v673_v1 }
 0x442   :  { %v693_v8 = vmax.f32 %v679_v63, 0.0 }
 0x443   :  { %v692_v3 = vmax.f32 %v674_v2, 0.0  ;;  %v1128_v4 = vpop.f32.mrb[8].mxu1 }
 0x444   :  { %v689_v9 = vadd.f32 %v1128_v4, %v954_v59  ;;  %v683_v10 = vpop.f32.mrb[9].mxu1  ;;  %v697_v33 = vadd.f32 %v693_v8, %v492_v18 }
 0x445   :  { %v684_v11 = vadd.f32 %v954_v59, %v683_v10  ;;  %1161 = vmatprep.mubr.f32.mxu1 %v692_v3 }
 0x446   :  { %1162 = vmatmul.mubr.f32.vlgmr.msra.gmra.mrb[10].mxu1 %v693_v8  ;;  %v695_v14 = vmax.f32 %v689_v9, 0.0 }
 0x447   :  { %v694_v12 = vmax.f32 %v684_v11, 0.0 }
 0x448   :  { %v699_v40 = vadd.f32 %v695_v14, %v494_v23 }
 0x449   :  { %1164 = vmatprep.mubr.f32.mxu1 %v694_v12  ;;  %v698_v13 = vadd.f32 %v694_v12, %v493_v22 }
 0x44a   :  { %1165 = vmatmul.mubr.f32.gmra.mrb[12].mxu1 %v695_v14 }
 0x519   :  { %v1163_v17 = vpop.f32.mrb[10].mxu1 }
 0x51a   :  { %v803_v20 = vmul.f32 %v1502_v61, %v1163_v17  ;;  %v783_v24 = vpop.f32.mrb[11].mxu1 }
 0x51b   :  { %v802_v25 = vmul.f32 %v1496_v58, %v783_v24  ;;  %v959_v58 = vld [vmem:[%s1609_s7] ss:$0 sm:$0xff]  ;;  %s1370_s7 = smov [#allocation7]  }
 0x51c   :  { %s918_s29 = sshll.u32 %s1370_s7, 4  ;;  %s919_s29 = int_to_ptr.vmem [resolvable:$true] %s918_s29 }
 0x51d   :  { %v1269_v26 = vpack.c.bf16 %v803_v20, %v802_v25  ;;  %v1166_v27 = vpop.f32.mrb[12].mxu1  ;;  %s1336_s4 = scalar_lea.vmem %s919_s29, 512  ;;  %p1341_p3 = scmp.lt.s32.totalorder %s919_s29, %s919_s29 }
 0x51e   :  { %v805_v28 = vmul.f32 %v1506_v0, %v1166_v27  ;;  %v793_v29 = vpop.f32.mrb[13].mxu1  ;;  %p1337_p2 = scmp.ne.s32.totalorder %s919_s29, %s1336_s4  ;;  %p1342_p4 = scmp.lt.s32.totalorder %s1336_s4, %s1336_s4 }
 0x51f   :  { %v804_v30 = vmul.f32 %v1499_v60, %v793_v29  ;;  %1270 = vmatprep.subr.bf16.mxu0 %v1269_v26 }
 0x520   :  { %1272 = vmatpush3.bf16.msra.mxu0 %v1269_v26  ;;  %p1343_p5 = por %p1342_p4, %p1341_p3 }
 0x521   :  { %v1273_v31 = vpack.c.bf16 %v805_v28, %v804_v30 }
 0x522   :  { %p1344_p6 = pnand %p1343_p5, %p1337_p2 }
 0x523   :  { %1274 = vmatprep.subr.bf16.mxu0 %v1273_v31 }
 0x524   :  { %1276 = vmatpush3.bf16.msra.mxu0 %v1273_v31 }
 0x527   :  { %1176 = vmatmul.mubr.msk.f32.vlgmr.msra.gmra.mrb[10].mxu0 %vm259_vm2, %v1512_v5  ;;  %v696_v5 = vadd.f32 %v692_v3, %v491_v16 }
 0x528   :  { %1178 = vmatprep.mubr.msk.f32.mxu0 %vm259_vm2, %v1516_v6 }
 0x52b   :  { %1179 = vmatmul.mubr.msk.f32.gmra.mrb[12].mxu0 %vm259_vm2, %v1524_v7 }
 0x5fa   :  { %v1177_v61 = vpop.f32.mrb[10].mxu0 }
 0x5fb   :  { %v884_v60 = vadd.f32 %v1177_v61, %v959_v58  ;;  %v878_v0 = vpop.f32.mrb[11].mxu0 }
 0x5fc   :  { %v879_v32 = vadd.f32 %v959_v58, %v878_v0 }
 0x5fd   :  { %v898_v34 = vmax.f32 %v884_v60, 0.0 }
 0x5fe   :  { %v897_v35 = vmax.f32 %v879_v32, 0.0  ;;  %v1180_v6 = vpop.f32.mrb[12].mxu0 }
 0x5ff   :  { %v902_v36 = vadd.f32 %v898_v34, %v697_v33  ;;  %v894_v37 = vadd.f32 %v1180_v6, %v959_v58  ;;  %v888_v7 = vpop.f32.mrb[13].mxu0 }
 0x600   :  { %v901_v38 = vadd.f32 %v897_v35, %v696_v5  ;;  %v889_v39 = vadd.f32 %v959_v58, %v888_v7 }
 0x601   :  { %v906_v41 = vmul.f32 0.33333334, %v902_v36  ;;  %v900_v42 = vmax.f32 %v894_v37, 0.0 }
 0x602   :  { %v905_v18 = vmul.f32 0.33333334, %v901_v38  ;;  %v899_v43 = vmax.f32 %v889_v39, 0.0 }
 0x603   :  { %910 = vst [vmem:[#allocation7 + $0x8] sm:$0xff] %v906_v41  ;;  %v904_v15 = vadd.f32 %v900_v42, %v699_v40 }
 0x604   :  { %909 = vst [vmem:[#allocation7] sm:$0xff] %v905_v18  ;;  %v903_v16 = vadd.f32 %v899_v43, %v698_v13 }
 0x605   :  { %v908_v44 = vmul.f32 0.33333334, %v904_v15 }
 0x606   :  { %v907_v45 = vmul.f32 0.33333334, %v903_v16 }
 0x607   :  { %912 = vst [vmem:[#allocation7 + $0x18] sm:$0xff] %v908_v44 }
 0x608   :  { %911 = vst [vmem:[#allocation7 + $0x10] sm:$0xff] %v907_v45 }
 0x609   :  { %1347 = shalt.err (!%p1344_p6)
}
 0x60a   :  { %s1348_s9 = scalar_lea.hbm %s1610_s8, 512 }
 0x60b   :  { %p1349_p7 = scmp.ne.s32.totalorder %s1610_s8, %s1348_s9  ;;  %p1352_p8 = scmp.lt.u32.totalorder %s1348_s9, %s1610_s8 }
 0x60d   :  { %p1354_p9 = pnand %p1352_p8, %p1349_p7 }
 0x60f   :  { %1357 = shalt.err (!%p1354_p9)
}
 0x610   :  { %924 = dma.vmem_to_hbm [thread:$0]  %s919_s29, 512, %s1610_s8, [#allocation4], %s1365_s15, %s1365_s15, %s1366_s16  }
 0x611   :  { %1362 = dma.done.wait [#allocation4], 512  }
 0x612   :  { %1363 = vsyncadd [#allocation4], 4294966784 }
 0x613   :  { %928 = vsyncpa [#allocation3], 1 }
 0x614   :  { %929 = vsyncpa [#allocation6], 1 }
 0x615   :  { %930 = vsyncpa [#allocation4], 1 }

</bundles_post_ra>
